<compile_context>
chip_gen: v5e
topology: v5e:2x2
jax: 0.10.0
libtpu: 0.0.40
codegen_flags: <defaults>
</compile_context>

<pallas_src>
import functools

import jax
import jax.numpy as jnp
from jax import lax
from jax.experimental import pallas as pl
from jax.experimental.pallas import tpu as pltpu


_NEG_INF = -1.0e9        # matches the torch "infinity_proxy" masking


def _vmem_capacity_bytes():
    try:
        return int(pltpu.get_tpu_info().vmem_capacity_bytes)
    except Exception:
        return 64 * 1024 * 1024          # conservative (v7x-sized) fallback


_VMEM_CAP = _vmem_capacity_bytes()
# Leave ~25% headroom for compiler-internal scratch + double buffers:
#   v7x (64 MiB VMEM/core) -> 48 MiB,  v5e/v6e (128 MiB) -> 96 MiB.
_VMEM_LIMIT = max(32 * 1024 * 1024, min(_VMEM_CAP * 3 // 4, 100 * 1024 * 1024))
# Bigger row tiles on the 128 MiB parts cut re-streaming of the target operand
# (HBM traffic ~ nrt * 2N * D) over v5e/v6e HBM; v7x keeps 256 rows for its
# halved VMEM.
_DEFAULT_ROW_TILE = 512 if _VMEM_CAP >= 96 * 1024 * 1024 else 256
_DEFAULT_COL_TILE = 512


def _detcon_kernel(pf_ref, tf_ref, kr_ref, kc_ref, out_ref, *, logit_bound):
    """One (2*TR, 2*TC) tile of the fused DetCon logits.

    pf_ref : (2*TR, D) bf16   [p0 rows ; p1 rows], L2-normalized, 1/T folded in
    tf_ref : (D, 2*TC) bf16   [t0 cols , t1 cols], L2-normalized, pre-transposed
    kr_ref : (2*TR, 1) int32  fused row keys (2*(batch*K+mask)+view, -1 = pad)
    kc_ref : (1, 2*TC) int32  fused column keys
    out_ref: (2*TR, 2) f32    accumulated in place over the column grid axis:
                              col 0 = sum_c exp(logit - 1/T)   (softmax denom)
                              col 1 = sum_{c in positives} logit
    """
    j = pl.program_id(1)

    @pl.when(j == 0)
    def _init():
        out_ref[...] = jnp.zeros_like(out_ref)

    # Single fused MXU matmul; its quadrants are the l_aa/l_ab/l_ba/l_bb blocks
    # (bf16 inputs, f32 accumulation).
    logits = jnp.dot(pf_ref[...], tf_ref[...],
                     preferred_element_type=jnp.float32)

    kr = kr_ref[...]                            # (2TR, 1)
    kc = kc_ref[...]                            # (1, 2TC)
    x = jnp.bitwise_xor(kr, kc)                 # broadcast -> (2TR, 2TC)
    pos = x == 1                   # same image+mask, other view -> positives
    bad = (x == 0) | (kc < 0)      # same-view positives + padded columns
    logits = jnp.where(bad, _NEG_INF, logits)

    # Features are unit-norm so |valid logit| <= 1/temperature: a static bound
    # replaces the running max.  exp never overflows, masked entries underflow
    # to exactly 0, no rescale pass is needed.  (Assumes exp(-2/temperature)
    # stays normal in f32, i.e. temperature >~ 0.025 -- true for DetCon.)
    p = jnp.exp(logits - logit_bound)

    sum_p = jnp.sum(p, axis=-1, keepdims=True)                            # (2TR,1)
    sum_s = jnp.sum(jnp.where(pos, logits, 0.0), axis=-1, keepdims=True)  # (2TR,1)

    # One fused read-modify-write of the (2*TR, 2) stats block per step.
    lane = lax.broadcasted_iota(jnp.int32, out_ref.shape, 1)
    out_ref[...] += jnp.where(lane == 0, sum_p, sum_s)


def _round_up(x, m):
    return (x + m - 1) // m * m


def _fuse_rows(a0, a1, n_tiles, tile):
    """Per-tile interleave: fused tile i = [a0 tile i ; a1 tile i]."""
    trailing = a0.shape[1:]
    a0 = a0.reshape((n_tiles, tile) + trailing)
    a1 = a1.reshape((n_tiles, tile) + trailing)
    return jnp.concatenate([a0, a1], axis=1).reshape(
        (n_tiles * 2 * tile,) + trailing)


@functools.partial(jax.jit,
                   static_argnames=("temperature", "row_tile", "col_tile"))
def detcon_loss(pred_view0, pred_view1, target_view0, target_view1,
                mask_view0, mask_view1, temperature=0.1,
                row_tile=None, col_tile=None):
    # TODO(synk): gather_distributed=True path is not implemented (the PyTorch
    # reference also raises NotImplementedError for it).
    if row_tile is None:
        row_tile = _DEFAULT_ROW_TILE
    if col_tile is None:
        col_tile = _DEFAULT_COL_TILE

    b, m, d = pred_view0.shape
    n = b * m
    inv_t = 1.0 / temperature

    # ---- wrapper-side layout plumbing (O(N*D)) -------------------------------
    def l2norm(x):
        s = jnp.sum(x * x, axis=-1, keepdims=True)
        return x * lax.rsqrt(jnp.maximum(s, 1e-24))    # == F.normalize(eps=1e-12)

    p0 = l2norm(pred_view0.reshape(n, d).astype(jnp.float32)) * inv_t
    p1 = l2norm(pred_view1.reshape(n, d).astype(jnp.float32)) * inv_t
    t0 = l2norm(target_view0.reshape(n, d).astype(jnp.float32))
    t1 = l2norm(target_view1.reshape(n, d).astype(jnp.float32))
    # MXU inputs in bf16; accumulation stays f32 inside the kernel.
    # TODO(synk): add an f32 matmul path if tolerances tighter than ~1e-2 are needed.
    p0, p1 = p0.astype(jnp.bfloat16), p1.astype(jnp.bfloat16)
    t0, t1 = t0.astype(jnp.bfloat16), t1.astype(jnp.bfloat16)

    m0 = mask_view0.reshape(n).astype(jnp.int32)
    m1 = mask_view1.reshape(n).astype(jnp.int32)
    bid = jnp.repeat(jnp.arange(b, dtype=jnp.int32), m)
    k_scale = jnp.maximum(jnp.max(m0), jnp.max(m1)).astype(jnp.int32) + 1
    fk0 = 2 * (bid * k_scale + m0)              # view 0 (pred0 / target0)
    fk1 = 2 * (bid * k_scale + m1) + 1          # view 1 (pred1 / target1)

    # ---- padding & per-tile fused layout -------------------------------------
    tr = min(row_tile, _round_up(n, 8))
    tc = min(col_tile, _round_up(n, 128))
    n_row_pad, n_col_pad = _round_up(n, tr), _round_up(n, tc)
    nrt, nct = n_row_pad // tr, n_col_pad // tc

    def pad_feat(a, total):
        return jnp.pad(a, ((0, total - n), (0, 0)))

    def pad_key(k, total):
        return jnp.pad(k, (0, total - n), constant_values=-1)

    pf = _fuse_rows(pad_feat(p0, n_row_pad), pad_feat(p1, n_row_pad), nrt, tr)
    tf = _fuse_rows(pad_feat(t0, n_col_pad), pad_feat(t1, n_col_pad), nct, tc).T
    kr = _fuse_rows(pad_key(fk0, n_row_pad), pad_key(fk1, n_row_pad),
                    nrt, tr).reshape(-1, 1)
    kc = _fuse_rows(pad_key(fk0, n_col_pad), pad_key(fk1, n_col_pad),
                    nct, tc).reshape(1, -1)

    grid_spec = pltpu.PrefetchScalarGridSpec(
        num_scalar_prefetch=0,
        grid=(nrt, nct),
        in_specs=[
            pl.BlockSpec((2 * tr, d), lambda i, j: (i, 0)),   # fused pred rows
            # tf is re-streamed once per row tile; use pipeline_mode=pl.Buffered(3)
            # here if profiling shows exposed DMA for large D on v5e.
            pl.BlockSpec((d, 2 * tc), lambda i, j: (0, j)),   # fused target cols
            pl.BlockSpec((2 * tr, 1), lambda i, j: (i, 0)),   # fused row keys
            pl.BlockSpec((1, 2 * tc), lambda i, j: (0, j)),   # fused col keys
        ],
        # Output block doubles as the accumulator: same block index for every j,
        # so it stays resident in VMEM across the streamed column axis and is
        # written back to HBM once per row tile.
        out_specs=pl.BlockSpec((2 * tr, 2), lambda i, j: (i, 0)),
    )

    stats = pl.pallas_call(
        functools.partial(_detcon_kernel, logit_bound=inv_t),
        out_shape=jax.ShapeDtypeStruct((nrt * 2 * tr, 2), jnp.float32),
        grid_spec=grid_spec,
        compiler_params=pltpu.CompilerParams(
            dimension_semantics=("parallel", "arbitrary"),
            vmem_limit_bytes=_VMEM_LIMIT),
    )(pf, tf, kr, kc)

    # ---- finalize in the wrapper (O(N) per-row math, O(B*M^2) counts) --------
    l_sum = stats[:, 0]                         # softmax denominator (scaled)
    s_sum = stats[:, 1]                         # sum of positive logits
    log_z = inv_t + jnp.log(l_sum)              # log-partition per fused row

    mv0 = mask_view0.astype(jnp.int32).reshape(b, m)
    mv1 = mask_view1.astype(jnp.int32).reshape(b, m)

    def count_same(ma, mb):                     # rows of ma vs columns of mb
        eq = (ma[:, :, None] == mb[:, None, :]).astype(jnp.float32)
        return jnp.sum(eq, axis=-1).reshape(n)

    num_pos0, num_pos1 = count_same(mv0, mv1), count_same(mv1, mv0)
    obj0, obj1 = count_same(mv0, mv0), count_same(mv1, mv1)
    ones = jnp.ones((n,), jnp.float32)

    def pad_vec(v, val=0.0):
        return jnp.pad(v, (0, n_row_pad - n), constant_values=val)

    num_pos = _fuse_rows(pad_vec(num_pos0), pad_vec(num_pos1), nrt, tr)
    obj_area = _fuse_rows(pad_vec(obj0, 1.0), pad_vec(obj1, 1.0), nrt, tr)
    valid = _fuse_rows(pad_vec(ones), pad_vec(ones), nrt, tr)

    w = (num_pos > 0.001).astype(jnp.float32) / obj_area          # exact division
    ce = -w * (s_sum - num_pos * log_z) / jnp.maximum(num_pos, 1.0)
    # mean_a + mean_b == sum over all fused rows / N (padded rows dropped).
    return jnp.sum(jnp.where(valid > 0, ce, 0.0)) / n


def detcon_loss_ref(pred0, pred1, tgt0, tgt1, mask0, mask1, temperature=0.1):
    """Pure-JAX transcription of the PyTorch forward (gather_distributed=False)."""
    b, m, d = pred0.shape
    inf = 1.0e9

    def norm(x):
        return x / jnp.maximum(jnp.linalg.norm(x, axis=-1, keepdims=True), 1e-12)

    p0, p1, t0, t1 = norm(pred0), norm(pred1), norm(tgt0), norm(tgt1)
    labels_local = jnp.eye(b, dtype=jnp.float32)[:, None, :, None]

    def ein(a, bb):
        return jnp.einsum('abk,uvk->abuv', a, bb) / temperature

    laa, lbb, lab, lba = ein(p0, t0), ein(p1, t1), ein(p0, t1), ein(p1, t0)

    def same(ma, mb):
        return (ma[:, :, None] == mb[:, None, :]).astype(jnp.float32)[:, :, None, :]

    saa, sbb = same(mask0, mask0), same(mask1, mask1)
    sab, sba = same(mask0, mask1), same(mask1, mask0)
    labels_aa, labels_bb = labels_local * saa, labels_local * sbb
    labels_ab, labels_ba = labels_local * sab, labels_local * sba
    laa = laa - inf * labels_aa
    lbb = lbb - inf * labels_bb
    labels_aa = 0.0 * labels_aa
    labels_bb = 0.0 * labels_bb

    labels_0 = jnp.concatenate([labels_ab, labels_aa], axis=2).reshape(b, m, -1)
    labels_1 = jnp.concatenate([labels_ba, labels_bb], axis=2).reshape(b, m, -1)
    np0 = jnp.sum(labels_0, -1, keepdims=True)
    np1 = jnp.sum(labels_1, -1, keepdims=True)
    labels_0 = labels_0 / jnp.maximum(np0, 1.0)
    labels_1 = labels_1 / jnp.maximum(np1, 1.0)
    oa0 = jnp.sum(same(mask0, mask0), axis=(2, 3))
    oa1 = jnp.sum(same(mask1, mask1), axis=(2, 3))
    w0 = (np0[..., 0] > 0.001).astype(jnp.float32) / oa0
    w1 = (np1[..., 0] > 0.001).astype(jnp.float32) / oa1
    logits_0 = jnp.concatenate([lab, laa], axis=2).reshape(b, m, -1)
    logits_1 = jnp.concatenate([lba, lbb], axis=2).reshape(b, m, -1)

    def ce(labels, logits, w):
        ls = jax.nn.log_softmax(logits, axis=-1)
        return jnp.mean(-w * jnp.sum(labels * ls, -1))

    return ce(labels_0, logits_0, w0) + ce(labels_1, logits_1, w1)


if __name__ == "__main__":
    def run_case(b, m, d, n_masks, seed, **tiles):
        ks = jax.random.split(jax.random.PRNGKey(seed), 6)
        pred0 = jax.random.normal(ks[0], (b, m, d), jnp.float32)
        pred1 = jax.random.normal(ks[1], (b, m, d), jnp.float32)
        tgt0 = jax.random.normal(ks[2], (b, m, d), jnp.float32)
        tgt1 = jax.random.normal(ks[3], (b, m, d), jnp.float32)
        mask0 = jax.random.randint(ks[4], (b, m), 0, n_masks, dtype=jnp.int32)
        mask1 = jax.random.randint(ks[5], (b, m), 0, n_masks, dtype=jnp.int32)

        loss = detcon_loss(pred0, pred1, tgt0, tgt1, mask0, mask1,
                           temperature=0.1, **tiles)
        jax.block_until_ready(loss)
        ref = detcon_loss_ref(pred0, pred1, tgt0, tgt1, mask0, mask1,
                              temperature=0.1)
        assert jnp.allclose(loss, ref, atol=2e-2, rtol=2e-2), (b, m, loss, ref)
        return loss

    # Small shape consistent with the module: B=2, M=8, D=32 (single tile).
    run_case(2, 8, 32, 6, seed=0)
    # Multi-tile case: exercises the streamed accumulation across row/column
    # tiles plus non-aligned-N padding.
    run_case(2, 160, 32, 12, seed=1, row_tile=128, col_tile=128)

    print("KERNEL_OK")
</pallas_src>

<mosaic_0001>
module attributes {stable_mosaic.version = 11 : i64} {
  func.func @_detcon_kernel(%arg0: i32, %arg1: i32, %arg2: memref<32x32xbf16, #tpu.memory_space<vmem>>, %arg3: memref<32x256xbf16, #tpu.memory_space<vmem>>, %arg4: memref<32x1xi32, #tpu.memory_space<vmem>>, %arg5: memref<1x256xi32, #tpu.memory_space<vmem>>, %arg6: memref<32x2xf32, #tpu.memory_space<vmem>>) attributes {dimension_semantics = [#tpu.dimension_semantics<parallel>, #tpu.dimension_semantics<arbitrary>], iteration_bounds = array<i64: 1, 1>, scalar_prefetch = 0 : i64, scratch_operands = 0 : i64, tpu.core_type = #tpu.core_type<tc>, window_params = [{transform_indices = @transform_0, window_bounds = array<i64: 32, 32>}, {transform_indices = @transform_1, window_bounds = array<i64: 32, 256>}, {transform_indices = @transform_2, window_bounds = array<i64: 32, 1>}, {transform_indices = @transform_3, window_bounds = array<i64: 1, 256>}, {transform_indices = @transform_4, window_bounds = array<i64: 32, 2>}]} {
    %c0_i32 = arith.constant 0 : i32
    %0 = arith.cmpi eq, %arg1, %c0_i32 : i32
    %1 = arith.extui %0 : i1 to i32
    %c0_i32_0 = arith.constant 0 : i32
    %2 = arith.cmpi ne, %1, %c0_i32_0 : i32
    scf.if %2 {
      %cst_20 = arith.constant 0.000000e+00 : f32
      %41 = vector.broadcast %cst_20 : f32 to vector<32x2xf32>
      %c0_21 = arith.constant 0 : index
      %c0_22 = arith.constant 0 : index
      %42 = vector.load %arg6[%c0_21, %c0_22] : memref<32x2xf32, #tpu.memory_space<vmem>>, vector<32x2xf32>
      tpu.vector_store %arg6[%c0_21, %c0_22], %41 {strides = array<i32>} : memref<32x2xf32, #tpu.memory_space<vmem>>, vector<32x2xf32>,
    } else {
    }
    %c0 = arith.constant 0 : index
    %c0_1 = arith.constant 0 : index
    %3 = vector.load %arg2[%c0, %c0_1] : memref<32x32xbf16, #tpu.memory_space<vmem>>, vector<32x32xbf16>
    %c0_2 = arith.constant 0 : index
    %c0_3 = arith.constant 0 : index
    %4 = vector.load %arg3[%c0_2, %c0_3] : memref<32x256xbf16, #tpu.memory_space<vmem>>, vector<32x256xbf16>
    %cst = arith.constant dense<0.000000e+00> : vector<32x256xf32>
    %5 = tpu.matmul %3, %4, %cst {dimension_numbers = #tpu.dot_dimension_numbers<[1], [0], [0], [1], [0, 0, 1, 1], [], []>} : vector<32x32xbf16>, vector<32x256xbf16>, vector<32x256xf32> -> vector<32x256xf32>
    %c0_4 = arith.constant 0 : index
    %c0_5 = arith.constant 0 : index
    %6 = vector.load %arg4[%c0_4, %c0_5] : memref<32x1xi32, #tpu.memory_space<vmem>>, vector<32x1xi32>
    %c0_6 = arith.constant 0 : index
    %c0_7 = arith.constant 0 : index
    %7 = vector.load %arg5[%c0_6, %c0_7] : memref<1x256xi32, #tpu.memory_space<vmem>>, vector<1x256xi32>
    %8 = vector.broadcast %6 : vector<32x1xi32> to vector<32x256xi32>
    %9 = vector.broadcast %7 : vector<1x256xi32> to vector<32x256xi32>
    %10 = arith.xori %8, %9 : vector<32x256xi32>
    %c1_i32 = arith.constant 1 : i32
    %11 = vector.broadcast %c1_i32 : i32 to vector<32x256xi32>
    %12 = arith.cmpi eq, %10, %11 : vector<32x256xi32>
    %c0_i32_8 = arith.constant 0 : i32
    %13 = vector.broadcast %c0_i32_8 : i32 to vector<32x256xi32>
    %14 = arith.cmpi eq, %10, %13 : vector<32x256xi32>
    %c0_i32_9 = arith.constant 0 : i32
    %15 = vector.broadcast %c0_i32_9 : i32 to vector<1x256xi32>
    %16 = arith.cmpi slt, %7, %15 : vector<1x256xi32>
    %17 = vector.broadcast %16 : vector<1x256xi1> to vector<32x256xi1>
    %18 = arith.ori %14, %17 : vector<32x256xi1>
    %cst_10 = arith.constant -1.000000e+09 : f32
    %19 = vector.broadcast %cst_10 : f32 to vector<32x256xf32>
    %20 = arith.select %18, %19, %5 : vector<32x256xi1>, vector<32x256xf32>
    %cst_11 = arith.constant 1.000000e+01 : f32
    %21 = vector.broadcast %cst_11 : f32 to vector<32x256xf32>
    %22 = arith.subf %20, %21 : vector<32x256xf32>
    %23 = math.exp %22 : vector<32x256xf32>
    %cst_12 = arith.constant dense<0.000000e+00> : vector<32xf32>
    %24 = vector.multi_reduction <add>, %23, %cst_12 [1] : vector<32x256xf32> to vector<32xf32>
    %25 = vector.shape_cast %24 : vector<32xf32> to vector<32x1xf32>
    %cst_13 = arith.constant 0.000000e+00 : f32
    %26 = vector.broadcast %cst_13 : f32 to vector<32x256xf32>
    %27 = arith.select %12, %20, %26 : vector<32x256xi1>, vector<32x256xf32>
    %cst_14 = arith.constant dense<0.000000e+00> : vector<32xf32>
    %28 = vector.multi_reduction <add>, %27, %cst_14 [1] : vector<32x256xf32> to vector<32xf32>
    %29 = vector.shape_cast %28 : vector<32xf32> to vector<32x1xf32>
    %30 = tpu.iota {dimensions = array<i32: 1>} : vector<32x2xi32>
    %c0_15 = arith.constant 0 : index
    %c0_16 = arith.constant 0 : index
    %31 = vector.load %arg6[%c0_15, %c0_16] : memref<32x2xf32, #tpu.memory_space<vmem>>, vector<32x2xf32>
    %c0_i32_17 = arith.constant 0 : i32
    %32 = vector.broadcast %c0_i32_17 : i32 to vector<32x2xi32>
    %33 = arith.cmpi eq, %30, %32 : vector<32x2xi32>
    %34 = vector.shape_cast %25 : vector<32x1xf32> to vector<32x1xf32>
    %35 = vector.broadcast %34 : vector<32x1xf32> to vector<32x2xf32>
    %36 = vector.shape_cast %29 : vector<32x1xf32> to vector<32x1xf32>
    %37 = vector.broadcast %36 : vector<32x1xf32> to vector<32x2xf32>
    %38 = arith.select %33, %35, %37 : vector<32x2xi1>, vector<32x2xf32>
    %39 = arith.addf %31, %38 : vector<32x2xf32>
    %c0_18 = arith.constant 0 : index
    %c0_19 = arith.constant 0 : index
    %40 = vector.load %arg6[%c0_18, %c0_19] : memref<32x2xf32, #tpu.memory_space<vmem>>, vector<32x2xf32>
    tpu.vector_store %arg6[%c0_18, %c0_19], %39 {strides = array<i32>} : memref<32x2xf32, #tpu.memory_space<vmem>>, vector<32x2xf32>,
    return
  }
  func.func @transform_0(%arg0: i32, %arg1: i32) -> (i32, i32) {
    %c0_i32 = arith.constant 0 : i32
    %c0_i32_0 = arith.constant 0 : i32
    return %arg0, %c0_i32 : i32, i32
  }
  func.func @transform_1(%arg0: i32, %arg1: i32) -> (i32, i32) {
    %c0_i32 = arith.constant 0 : i32
    %c0_i32_0 = arith.constant 0 : i32
    return %c0_i32, %arg1 : i32, i32
  }
  func.func @transform_2(%arg0: i32, %arg1: i32) -> (i32, i32) {
    %c0_i32 = arith.constant 0 : i32
    %c0_i32_0 = arith.constant 0 : i32
    return %arg0, %c0_i32 : i32, i32
  }
  func.func @transform_3(%arg0: i32, %arg1: i32) -> (i32, i32) {
    %c0_i32 = arith.constant 0 : i32
    %c0_i32_0 = arith.constant 0 : i32
    return %c0_i32, %arg1 : i32, i32
  }
  func.func @transform_4(%arg0: i32, %arg1: i32) -> (i32, i32) {
    %c0_i32 = arith.constant 0 : i32
    %c0_i32_0 = arith.constant 0 : i32
    return %arg0, %c0_i32 : i32, i32
  }
}

</mosaic_0001>

<bundles_post_ra>
// kernel: detcon_loss.1
= control target key start
LH: loop header
LB: loop body
LE: loop exit
PB: predicated region body
PF: predicated region fallthrough
CT: control target
= control target key end

     0   :  { %v321_v3 = vmov 0   ;;  %vm65_vm0 = vcmask 261120   ;;  %s509_s1 = inlined_call_operand.vmem [shape: bf16[32,256], index: 1, kind: input, shape index: {}]   ;;  %s510_s2 = inlined_call_operand.vmem [shape: s32[32,1], index: 2, kind: input, shape index: {}]   ;;  %s511_s0 = inlined_call_operand.vmem [shape: bf16[32,32], index: 0, kind: input, shape index: {}]   ;;  %s512_s3 = inlined_call_operand.vmem [shape: s32[1,256], index: 3, kind: input, shape index: {}]   ;;  %s513_s4 = inlined_call_operand.vmem [shape: f32[32,2], index: 4, kind: output, shape index: {}]  }
   0x1   :  { %v273_v0 = vld [vmem:[%s509_s1 + $0x10] sm:$0xf]  ;;  %v296_v1 = vld [vmem:[%s509_s1 + $0x14] sm:$0xf0]  ;;  %v295_v2 = vld [vmem:[%s509_s1 + $0x14] sm:$0xf]  ;;  %303 = vset.pattern.permute.xlu0 %v321_v3  ;;  %304 = vset.pattern.permute.xlu1 %v321_v3 }
   0x2   :  { %v274_v4 = vor.u32 %v296_v1, %v273_v0  ;;  %v275_v5 = vld [vmem:[%s509_s1 + $0x18] sm:$0xf0]  ;;  %v265_v6 = vld [vmem:[%s509_s1] sm:$0xf]  ;;  %v294_v7 = vld [vmem:[%s509_s1 + $0x4] sm:$0xf0] }
   0x3   :  { %v278_v8 = vor.u32 %v295_v2, %v275_v5  ;;  %v293_v9 = vld [vmem:[%s509_s1 + $0x4] sm:$0xf]  ;;  %v267_v10 = vld [vmem:[%s509_s1 + $0x8] sm:$0xf0]  ;;  %v266_v11 = vor.u32 %v294_v7, %v265_v6  ;;  %v112_v14 = vld [vmem:[%s510_s2 + $0x10] sm:$0xff] }
   0x4   :  { %78 = vmatpush.bf16.msra.mxu0 %v274_v4  ;;  %v110_v12 = vld [vmem:[%s510_s2] sm:$0xff]  ;;  %297 = vmatpush.bf16.msra.mxu2 %v274_v4  ;;  %v270_v13 = vor.u32 %v293_v9, %v267_v10  ;;  %v292_v16 = vld [vmem:[%s511_s0 + $0x8] sm:$0xff]  ;;  %v113_v18 = vld [vmem:[%s510_s2 + $0x18] sm:$0xff] }
   0x5   :  { %97 = vmatpush.bf16.msra.mxu1 %v278_v8  ;;  %116 = vperm.xlu0 %303, %v110_v12   ;;  %v291_v15 = vld [vmem:[%s511_s0] sm:$0xff]  ;;  %v111_v17 = vld [vmem:[%s510_s2 + $0x8] sm:$0xff] }
   0x6   :  { %299 = vmatpush.bf16.msra.mxu3 %v278_v8  ;;  %122 = vperm.xlu1 %304, %v112_v14   ;;  %v114_v19 = vld [vmem:[%s512_s3] sm:$0x3] }
   0x7   :  { %vm153_vm1 = vcmp.lt.s32.totalorder %v114_v19, 0  ;;  %v127_v20 = vperm.slane %v114_v19, 0  ;;  %v128_v21 = vperm.slane %v114_v19, 1 }
   0x8   :  { %79 = vmatpush.bf16.msra.mxu0 %v266_v11  ;;  %298 = vmatpush.bf16.msra.mxu2 %v266_v11  ;;  %v154_v22 = vsel %vm153_vm1, 1, %v321_v3 }
   0x9   :  { %98 = vmatpush.bf16.msra.mxu1 %v270_v13  ;;  %v155_v24 = vperm.slane %v154_v22, 0  ;;  %v156_v26 = vperm.slane %v154_v22, 1 }
   0xa   :  { %300 = vmatpush.bf16.msra.mxu3 %v270_v13 }
   0xb   :  { %279 = vmatmul.msk.bf16.vlgmr.msra.gmra.mxu0 %vm65_vm0, %v291_v15  ;;  %280 = vmatmul.msk.bf16.vlgmr.msra.gmra.mxu2 %vm65_vm0, %v292_v16  ;;  %vm398_vm3 = vcmp.eq.s32.totalorder %v155_v24, 1  ;;  %vm403_vm5 = vcmp.eq.s32.totalorder %v156_v26, 1 }
   0xc   :  { %281 = vmatmul.msk.bf16.vlgmr.msra.gmra.mxu1 %vm65_vm0, %v291_v15 }
   0xd   :  { %119 = vperm.xlu0 %303, %v111_v17   ;;  %282 = vmatmul.msk.bf16.vlgmr.msra.gmra.mxu3 %vm65_vm0, %v292_v16 }
   0xe   :  { %125 = vperm.xlu1 %304, %v113_v18  }
  0x77   :  { %v117_v23 = vpop.permute.xlu0 %116 }
  0x78   :  { %v393_v25 = vxor.u32 %v127_v20, %v117_v23  ;;  %v395_v27 = vxor.u32 %v128_v21, %v117_v23  ;;  %v123_v28 = vpop.permute.xlu1 %122 }
  0x79   :  { %v407_v31 = vxor.u32 %v127_v20, %v123_v28  ;;  %v413_v33 = vxor.u32 %v128_v21, %v123_v28 }
  0x7a   :  { %vm145_vm2 = vcmp.eq.s32.totalorder %v393_v25, 0  ;;  %vm146_vm4 = vcmp.eq.s32.totalorder %v395_v27, 0 }
  0x7b   :  { %vm159_vm6 = vmor %vm145_vm2, %vm398_vm3  ;;  %vm149_vm8 = vcmp.eq.s32.totalorder %v407_v31, 0  ;;  %vm150_vm9 = vcmp.eq.s32.totalorder %v413_v33, 0 }
  0x7c   :  { %vm160_vm7 = vmor %vm146_vm4, %vm403_vm5 }
  0x7d   :  { %vm163_vm10 = vmor %vm149_vm8, %vm398_vm3  ;;  %vm141_vm8 = vcmp.eq.s32.totalorder %v407_v31, 1 }
  0x7e   :  { %vm164_vm13 = vmor %vm150_vm9, %vm403_vm5  ;;  %vm142_vm9 = vcmp.eq.s32.totalorder %v413_v33, 1  ;;  %v231_v33 = vlaneseq }
  0x7f   :  { %v120_v32 = vpop.permute.xlu0 %119 }
  0x80   :  { %v415_v35 = vxor.u32 %v127_v20, %v120_v32  ;;  %v420_v38 = vxor.u32 %v128_v21, %v120_v32  ;;  %v126_v41 = vpop.permute.xlu1 %125  ;;  %v322_v32 = vmov 0.0  }
  0x81   :  { %v430_v45 = vxor.u32 %v127_v20, %v126_v41  ;;  %v437_v48 = vxor.u32 %v128_v21, %v126_v41 }
  0x82   :  { %vm147_vm11 = vcmp.eq.s32.totalorder %v415_v35, 0  ;;  %vm148_vm12 = vcmp.eq.s32.totalorder %v420_v38, 0 }
  0x83   :  { %vm161_vm14 = vmor %vm147_vm11, %vm398_vm3  ;;  %vm151_vm0 = vcmp.eq.s32.totalorder %v430_v45, 0  ;;  %vm152_vm1 = vcmp.eq.s32.totalorder %v437_v48, 0  ;;  %vm144_vm11 = vcmp.eq.s32.totalorder %v437_v48, 1 }
  0x84   :  { %vm162_vm15 = vmor %vm148_vm12, %vm403_vm5  ;;  %vm22_vm12 = vcmask 15360  }
  0x85   :  { %vm165_vm2 = vmor %vm151_vm0, %vm398_vm3  ;;  %vm137_vm3 = vcmp.eq.s32.totalorder %v393_v25, 1  ;;  %23 = vst.msk [vmem:[%s513_s4] sm:$0xff] %vm22_vm12, %v322_v32 }
  0x86   :  { %vm166_vm4 = vmor %vm152_vm1, %vm403_vm5  ;;  %vm138_vm5 = vcmp.eq.s32.totalorder %v395_v27, 1  ;;  %24 = vst.msk [vmem:[%s513_s4 + $0x8] sm:$0xff] %vm22_vm12, %v322_v32 }
  0x87   :  { %25 = vst.msk [vmem:[%s513_s4 + $0x10] sm:$0xff] %vm22_vm12, %v322_v32 }
  0x88   :  { %v81_v34 = vpop.f32.mrf.mxu0  ;;  %26 = vst.msk [vmem:[%s513_s4 + $0x18] sm:$0xff] %vm22_vm12, %v322_v32 }
  0x89   :  { %v417_v36 = vsel %vm159_vm6, -1e+09, %v81_v34  ;;  %v100_v37 = vpop.f32.mrf.mxu1  ;;  %vm139_vm6 = vcmp.eq.s32.totalorder %v415_v35, 1  ;;  %v232_v35 = vand.u32 127, %v231_v33 }
  0x8a   :  { %v283_v39 = vadd.f32 -10.0, %v417_v36  ;;  %v423_v40 = vsel %vm160_vm7, -1e+09, %v100_v37  ;;  %v211_v17 = vsel %vm137_vm3, %v417_v36, 0.0  ;;  %vm140_vm7 = vcmp.eq.s32.totalorder %v420_v38, 1 }
  0x8b   :  { %v284_v42 = vadd.f32 -10.0, %v423_v40  ;;  %v212_v18 = vsel %vm138_vm5, %v423_v40, 0.0 }
  0x8c   :  { %v183_v43 = vmul.f32 1.442695, %v283_v39  ;;  %v219_v21 = vadd.f32 %v212_v18, %v211_v17  ;;  %v233_v36 = vld [vmem:[%s513_s4] sm:$0xff] }
  0x8d   :  { %v185_v44 = vmul.f32 1.442695, %v284_v42  ;;  %v234_v40 = vld [vmem:[%s513_s4 + $0x8] sm:$0xff] }
  0x8e   :  { %305 = vpow2.f32 %v183_v43  ;;  %v86_v46 = vpop.f32.mrf.mxu2 }
  0x8f   :  { %307 = vpow2.f32 %v185_v44  ;;  %v435_v47 = vsel %vm163_vm10, -1e+09, %v86_v46  ;;  %vm143_vm10 = vcmp.eq.s32.totalorder %v430_v45, 1  ;;  %v235_v45 = vld [vmem:[%s513_s4 + $0x10] sm:$0xff] }
  0x90   :  { %v83_v49 = vpop.f32.mrf.mxu0  ;;  %v287_v50 = vadd.f32 -10.0, %v435_v47  ;;  %v105_v51 = vpop.f32.mrf.mxu3  ;;  %v215_v25 = vsel %vm141_vm8, %v435_v47, 0.0 }
  0x91   :  { %v169_v52 = vsel %vm161_vm14, -1e+09, %v83_v49  ;;  %v102_v53 = vpop.f32.mrf.mxu1  ;;  %v172_v54 = vsel %vm164_vm13, -1e+09, %v105_v51  ;;  %vm237_vm13 = vcmp.eq.s32.totalorder %v232_v35, 0  ;;  %v236_v49 = vld [vmem:[%s513_s4 + $0x18] sm:$0xff] }
  0x92   :  { %v285_v55 = vadd.f32 -10.0, %v169_v52  ;;  %v170_v56 = vsel %vm162_vm15, -1e+09, %v102_v53  ;;  %v191_v57 = vmul.f32 1.442695, %v287_v50  ;;  %v288_v59 = vadd.f32 -10.0, %v172_v54 }
  0x93   :  { %v286_v58 = vadd.f32 -10.0, %v170_v56  ;;  %v213_v22 = vsel %vm139_vm6, %v169_v52, 0.0  ;;  %v214_v23 = vsel %vm140_vm7, %v170_v56, 0.0  ;;  %v216_v26 = vsel %vm142_vm9, %v172_v54, 0.0 }
  0x94   :  { %v306_v60 = vpop.eup %305  ;;  %v187_v61 = vmul.f32 1.442695, %v285_v55  ;;  %309 = vpow2.f32 %v191_v57  ;;  %v193_v0 = vmul.f32 1.442695, %v288_v59  ;;  %v222_v24 = vadd.f32 %v214_v23, %v213_v22 }
  0x95   :  { %v308_v62 = vpop.eup %307  ;;  %v189_v63 = vmul.f32 1.442695, %v286_v58  ;;  %v225_v27 = vadd.f32 %v216_v26, %v215_v25 }
  0x96   :  { %311 = vpow2.f32 %v187_v61  ;;  %v199_v1 = vadd.f32 %v308_v62, %v306_v60  ;;  %v88_v2 = vpop.f32.mrf.mxu2 }
  0x97   :  { %313 = vpow2.f32 %v189_v63  ;;  %v173_v3 = vsel %vm165_vm2, -1e+09, %v88_v2 }
  0x98   :  { %200 = vadd.xlane.f32.xlu2 %v199_v1  ;;  %315 = vpow2.f32 %v193_v0  ;;  %v289_v4 = vadd.f32 -10.0, %v173_v3  ;;  %v107_v5 = vpop.f32.mrf.mxu3  ;;  %v217_v28 = vsel %vm143_vm10, %v173_v3, 0.0 }
  0x99   :  { %v174_v6 = vsel %vm166_vm4, -1e+09, %v107_v5 }
  0x9a   :  { %v195_v7 = vmul.f32 1.442695, %v289_v4  ;;  %v290_v8 = vadd.f32 -10.0, %v174_v6  ;;  %v310_v9 = vpop.eup %309  ;;  %v218_v29 = vsel %vm144_vm11, %v174_v6, 0.0 }
  0x9b   :  { %v228_v30 = vadd.f32 %v218_v29, %v217_v28 }
  0x9c   :  { %v312_v10 = vpop.eup %311  ;;  %317 = vpow2.f32 %v195_v7  ;;  %v197_v11 = vmul.f32 1.442695, %v290_v8 }
  0x9d   :  { %v314_v12 = vpop.eup %313 }
  0x9e   :  { %v316_v13 = vpop.eup %315  ;;  %v202_v14 = vadd.f32 %v314_v12, %v312_v10  ;;  %319 = vpow2.f32 %v197_v11 }
  0x9f   :  { %v205_v15 = vadd.f32 %v316_v13, %v310_v9 }
  0xa0   :  { %203 = vadd.xlane.f32.xlu2 %v202_v14 }
  0xa1   :  { %206 = vadd.xlane.f32.xlu0 %v205_v15 }
  0xa2   :  { %v318_v16 = vpop.eup %317 }
  0xa4   :  { %v320_v19 = vpop.eup %319 }
  0xa5   :  { %v208_v20 = vadd.f32 %v320_v19, %v318_v16 }
  0xa7   :  { %209 = vadd.xlane.f32.xlu1 %v208_v20 }
  0xa8   :  { %220 = vadd.xlane.f32.xlu2 %v219_v21 }
  0xb0   :  { %223 = vadd.xlane.f32.xlu2 %v222_v24 }
  0xb8   :  { %226 = vadd.xlane.f32.xlu2 %v225_v27 }
  0xc0   :  { %229 = vadd.xlane.f32.xlu2 %v228_v30 }
 0x10b   :  { %v201_v31 = vpop.xlane.xlu2 %200 }
 0x113   :  { %v204_v34 = vpop.xlane.xlu2 %203 }
 0x114   :  { %v207_v44 = vpop.xlane.xlu0 %206 }
 0x11a   :  { %v210_v50 = vpop.xlane.xlu1 %209 }
 0x11b   :  { %v221_v37 = vpop.xlane.xlu2 %220 }
 0x11c   :  { %v238_v38 = vsel %vm237_vm13, %v201_v31, %v221_v37 }
 0x11d   :  { %v242_v39 = vadd.f32 %v238_v38, %v233_v36 }
 0x11f   :  { %247 = vst.msk [vmem:[%s513_s4] sm:$0xff] %vm22_vm12, %v242_v39 }
 0x123   :  { %v224_v41 = vpop.xlane.xlu2 %223 }
 0x124   :  { %v239_v42 = vsel %vm237_vm13, %v204_v34, %v224_v41 }
 0x125   :  { %v243_v43 = vadd.f32 %v239_v42, %v234_v40 }
 0x127   :  { %248 = vst.msk [vmem:[%s513_s4 + $0x8] sm:$0xff] %vm22_vm12, %v243_v43 }
 0x12b   :  { %v227_v46 = vpop.xlane.xlu2 %226 }
 0x12c   :  { %v240_v47 = vsel %vm237_vm13, %v207_v44, %v227_v46 }
 0x12d   :  { %v244_v48 = vadd.f32 %v240_v47, %v235_v45 }
 0x12f   :  { %249 = vst.msk [vmem:[%s513_s4 + $0x10] sm:$0xff] %vm22_vm12, %v244_v48 }
 0x133   :  { %v230_v51 = vpop.xlane.xlu2 %229 }
 0x134   :  { %v241_v52 = vsel %vm237_vm13, %v210_v50, %v230_v51 }
 0x135   :  { %v245_v53 = vadd.f32 %v241_v52, %v236_v49 }
 0x137   :  { %250 = vst.msk [vmem:[%s513_s4 + $0x18] sm:$0xff] %vm22_vm12, %v245_v53 }

</bundles_post_ra>
